<compile_context>
chip_gen: v7x
topology: tpu7x:2x2x1
jax: 0.10.0
libtpu: 0.0.40
codegen_flags: <defaults>
</compile_context>

<pallas_src>
import jax
import jax.numpy as jnp
from jax.experimental import pallas as pl
from jax.experimental.pallas import tpu as pltpu


TB_MAX = 256            # max batch-tile rows per grid step (multiple of 8)
PALLAS_BATCH_THRESHOLD = 1024   # below this, fused XLA beats any custom call


def _round_up(x, m):
    return (x + m - 1) // m * m


def linear_clamp_kernel(x_ref, w_ref, b_ref, o_ref):
    # x: (TB, IN), w: (IN, OUT_PAD), b: (1, OUT_PAD), o: (TB, OUT_PAD)
    y = jnp.dot(x_ref[...], w_ref[...], preferred_element_type=jnp.float32)
    y = y + b_ref[...]
    # clamp_min(0) then clamp_max(5) == clip to [0, 5]
    o_ref[...] = jnp.clip(y, 0.0, 5.0).astype(o_ref.dtype)


def linear_clamp_pallas(x, w, b):
    """x: (B, IN) f32, w: (IN, OUT) f32, b: (OUT,) f32 -> (B, OUT) f32."""
    B, IN = x.shape
    OUT = w.shape[1]

    # Lane-dense output: pad OUT up to a multiple of 128 (>= 128).
    out_pad = _round_up(max(OUT, 128), 128)
    # Batch tile: multiple of 8, capped at TB_MAX.
    tb = min(TB_MAX, _round_up(B, 8))
    b_pad = _round_up(B, tb)

    x_p = x if b_pad == B else jnp.pad(x, ((0, b_pad - B), (0, 0)))
    w_p = jnp.pad(w, ((0, 0), (0, out_pad - OUT)))
    bias_p = jnp.pad(b, (0, out_pad - OUT)).reshape(1, out_pad)

    grid = (b_pad // tb,)

    out = pl.pallas_call(
        linear_clamp_kernel,
        out_shape=jax.ShapeDtypeStruct((b_pad, out_pad), jnp.float32),
        grid_spec=pltpu.PrefetchScalarGridSpec(
            num_scalar_prefetch=0,
            grid=grid,
            in_specs=[
                # x: tiled over batch
                pl.BlockSpec((tb, IN), lambda i: (i, 0)),
                # w, b: constant index_map -> resident across grid steps
                pl.BlockSpec((IN, out_pad), lambda i: (0, 0)),
                pl.BlockSpec((1, out_pad), lambda i: (0, 0)),
            ],
            out_specs=pl.BlockSpec((tb, out_pad), lambda i: (i, 0)),
        ),
        compiler_params=pltpu.CompilerParams(
            # Independent batch tiles -> shard across TensorCores (v7x).
            dimension_semantics=("parallel",),
        ),
    )(x_p, w_p, bias_p)

    return out[:B, :OUT]


def linear_clamp(x, w, b):
    """Dispatcher: tiny problems use fused XLA; large batches use Pallas."""
    if x.shape[0] < PALLAS_BATCH_THRESHOLD:
        return jnp.clip(x @ w + b, 0.0, 5.0)
    return linear_clamp_pallas(x, w, b)


if __name__ == "__main__":
    key = jax.random.PRNGKey(0)
    kx, kw, kb, kxb = jax.random.split(key, 4)

    # Shapes implied by the module: x1 = torch.randn(1, 10), Linear(10, 20).
    B, IN, OUT = 1, 10, 20

    x = jax.random.normal(kx, (B, IN), dtype=jnp.float32)
    # torch.nn.Linear stores weight as (OUT, IN); we store its transpose (IN, OUT).
    w = jax.random.uniform(kw, (IN, OUT), dtype=jnp.float32,
                           minval=-1.0 / jnp.sqrt(IN), maxval=1.0 / jnp.sqrt(IN))
    b = jax.random.uniform(kb, (OUT,), dtype=jnp.float32,
                           minval=-1.0 / jnp.sqrt(IN), maxval=1.0 / jnp.sqrt(IN))

    # Exercise the Pallas kernel directly at the module's shape (B=1).
    out = linear_clamp_pallas(x, w, b)
    jax.block_until_ready(out)
    ref = jnp.clip(x @ w + b, 0.0, 5.0)
    assert out.shape == (B, OUT)
    assert jnp.allclose(out, ref, atol=1e-5), "mismatch vs reference (B=1)"

    # Also exercise batch tiling + padding (non-multiple batch, multi-step grid).
    Bb = 300
    xb = jax.random.normal(kxb, (Bb, IN), dtype=jnp.float32)
    out_b = linear_clamp_pallas(xb, w, b)
    jax.block_until_ready(out_b)
    ref_b = jnp.clip(xb @ w + b, 0.0, 5.0)
    assert out_b.shape == (Bb, OUT)
    assert jnp.allclose(out_b, ref_b, atol=1e-5), "mismatch vs reference (B=300)"

    print("KERNEL_OK")
</pallas_src>

<mosaic_0001>
module attributes {stable_mosaic.version = 11 : i64} {
  func.func @linear_clamp_kernel(%arg0: i32, %arg1: memref<8x10xf32, #tpu.memory_space<vmem>>, %arg2: memref<10x128xf32, #tpu.memory_space<vmem>>, %arg3: memref<1x128xf32, #tpu.memory_space<vmem>>, %arg4: memref<8x128xf32, #tpu.memory_space<vmem>>) attributes {dimension_semantics = [#tpu.dimension_semantics<parallel>], iteration_bounds = array<i64: 1>, scalar_prefetch = 0 : i64, scratch_operands = 0 : i64, tpu.core_type = #tpu.core_type<tc>, window_params = [{transform_indices = @transform_0, window_bounds = array<i64: 8, 10>}, {pipeline_mode = #tpu.pipeline_mode<synchronous>, transform_indices = @transform_1, window_bounds = array<i64: 10, 128>}, {pipeline_mode = #tpu.pipeline_mode<synchronous>, transform_indices = @transform_2, window_bounds = array<i64: 1, 128>}, {transform_indices = @transform_3, window_bounds = array<i64: 8, 128>}]} {
    %c0 = arith.constant 0 : index
    %c0_0 = arith.constant 0 : index
    %0 = vector.load %arg1[%c0, %c0_0] : memref<8x10xf32, #tpu.memory_space<vmem>>, vector<8x10xf32>
    %c0_1 = arith.constant 0 : index
    %c0_2 = arith.constant 0 : index
    %1 = vector.load %arg2[%c0_1, %c0_2] : memref<10x128xf32, #tpu.memory_space<vmem>>, vector<10x128xf32>
    %cst = arith.constant dense<0.000000e+00> : vector<8x128xf32>
    %2 = tpu.matmul %0, %1, %cst {dimension_numbers = #tpu.dot_dimension_numbers<[1], [0], [0], [1], [0, 0, 1, 1], [], []>} : vector<8x10xf32>, vector<10x128xf32>, vector<8x128xf32> -> vector<8x128xf32>
    %c0_3 = arith.constant 0 : index
    %c0_4 = arith.constant 0 : index
    %3 = vector.load %arg3[%c0_3, %c0_4] : memref<1x128xf32, #tpu.memory_space<vmem>>, vector<1x128xf32>
    %4 = vector.broadcast %3 : vector<1x128xf32> to vector<8x128xf32>
    %5 = arith.addf %2, %4 : vector<8x128xf32>
    %cst_5 = arith.constant 0.000000e+00 : f32
    %cst_6 = arith.constant 5.000000e+00 : f32
    %6 = vector.broadcast %cst_5 : f32 to vector<8x128xf32>
    %7 = arith.maximumf %6, %5 : vector<8x128xf32>
    %8 = vector.broadcast %cst_6 : f32 to vector<8x128xf32>
    %9 = arith.minimumf %8, %7 : vector<8x128xf32>
    %c0_7 = arith.constant 0 : index
    %c0_8 = arith.constant 0 : index
    %10 = vector.load %arg4[%c0_7, %c0_8] : memref<8x128xf32, #tpu.memory_space<vmem>>, vector<8x128xf32>
    tpu.vector_store %arg4[%c0_7, %c0_8], %9 {strides = array<i32>} : memref<8x128xf32, #tpu.memory_space<vmem>>, vector<8x128xf32>,
    return
  }
  func.func @transform_0(%arg0: i32) -> (i32, i32) {
    %c0_i32 = arith.constant 0 : i32
    %c0_i32_0 = arith.constant 0 : i32
    return %arg0, %c0_i32 : i32, i32
  }
  func.func @transform_1(%arg0: i32) -> (i32, i32) {
    %c0_i32 = arith.constant 0 : i32
    %c0_i32_0 = arith.constant 0 : i32
    %c0_i32_1 = arith.constant 0 : i32
    return %c0_i32, %c0_i32_0 : i32, i32
  }
  func.func @transform_2(%arg0: i32) -> (i32, i32) {
    %c0_i32 = arith.constant 0 : i32
    %c0_i32_0 = arith.constant 0 : i32
    %c0_i32_1 = arith.constant 0 : i32
    return %c0_i32, %c0_i32_0 : i32, i32
  }
  func.func @transform_3(%arg0: i32) -> (i32, i32) {
    %c0_i32 = arith.constant 0 : i32
    %c0_i32_0 = arith.constant 0 : i32
    return %arg0, %c0_i32 : i32, i32
  }
}

</mosaic_0001>

<bundles_post_ra>
// kernel: tpu_custom_call.1
= control target key start
LH: loop header
LB: loop body
LE: loop exit
PB: predicated region body
PF: predicated region fallthrough
CT: control target
= control target key end

     0   :  { %8 = vsyncpa [#allocation3], 0  ;;  %s321_s0 = inlined_call_operand.hbm [shape: f32[8,10], index: 0, kind: input, shape index: {}]   ;;  %s322_s1 = inlined_call_operand.hbm [shape: f32[10,128], index: 1, kind: input, shape index: {}]   ;;  %s323_s2 = inlined_call_operand.vmem [shape: f32[1,128], index: 2, kind: input, shape index: {}]   ;;  %s324_s3 = inlined_call_operand.hbm [shape: f32[8,128], index: 3, kind: output, shape index: {}]  }
   0x1   :  { %9 = vsyncpa [#allocation6], 0 }
   0x2   :  { %10 = vsyncpa [#allocation4], 0  ;;  %s246_s12 = smov [#allocation2]   ;;  %s247_s14 = smov [#allocation5]  }
   0x3   :  { %s17_s13 = sshll.u32 %s246_s12, 4  ;;  %s26_s15 = sshll.u32 %s247_s14, 4  ;;  %s18_s13 = int_to_ptr.vmem [resolvable:$true] %s17_s13  ;;  %s275_s15 = int_to_ptr.vmem [resolvable:$true] %s26_s15 }
   0x4   :  { %s174_s18 = scalar_lea.hbm %s321_s0, 128 }
   0x5   :  { %p175_p0 = scmp.ne.s32.totalorder %s321_s0, %s174_s18  ;;  %p178_p1 = scmp.lt.u32.totalorder %s174_s18, %s321_s0 }
   0x7   :  { %p180_p2 = pnand %p178_p1, %p175_p0 }
   0x9   :  { %183 = shalt.err (!%p180_p2)
}
   0xa   :  { %s184_s23 = scalar_lea.vmem %s18_s13, 128  ;;  %p189_p4 = scmp.lt.s32.totalorder %s18_s13, %s18_s13 }
   0xb   :  { %p185_p3 = scmp.ne.s32.totalorder %s18_s13, %s184_s23  ;;  %p190_p5 = scmp.lt.s32.totalorder %s184_s23, %s184_s23 }
   0xd   :  { %p191_p6 = por %p190_p5, %p189_p4 }
   0xf   :  { %p192_p7 = pnand %p191_p6, %p185_p3 }
  0x11   :  { %195 = shalt.err (!%p192_p7)
}
  0x12   :  { %20 = dma.hbm_to_vmem [thread:$0]  %s321_s0, 128, %s18_s13, [#allocation3]  }
  0x13   :  { %s196_s28 = scalar_lea.hbm %s322_s1, 256 }
  0x14   :  { %p197_p8 = scmp.ne.s32.totalorder %s322_s1, %s196_s28  ;;  %p200_p9 = scmp.lt.u32.totalorder %s196_s28, %s322_s1 }
  0x16   :  { %p202_p10 = pnand %p200_p9, %p197_p8 }
  0x18   :  { %205 = shalt.err (!%p202_p10)
}
  0x19   :  { %s206_s6 = scalar_lea.vmem %s275_s15, 256  ;;  %p211_p12 = scmp.lt.s32.totalorder %s275_s15, %s275_s15 }
  0x1a   :  { %p207_p11 = scmp.ne.s32.totalorder %s275_s15, %s206_s6  ;;  %p212_p13 = scmp.lt.s32.totalorder %s206_s6, %s206_s6 }
  0x1c   :  { %p213_p0 = por %p212_p13, %p211_p12 }
  0x1e   :  { %p214_p1 = pnand %p213_p0, %p207_p11 }
  0x20   :  { %217 = shalt.err (!%p214_p1)
}
  0x21   :  { %s248_s0 = smov 128   ;;  %s249_s7 = smov 8  }
  0x22   :  { %32 = dma.hbm_to_vmem [thread:$0]  %s322_s1, 256, %s275_s15, [#allocation6], %s248_s0, %s248_s0, %s249_s7  }
  0x23   :  { %240 = dma.done.wait [#allocation3], 128  }
  0x24   :  { %241 = vsyncadd [#allocation3], 4294967168 }
  0x25   :  { %242 = dma.done.wait [#allocation6], 256  }
  0x26   :  { %243 = vsyncadd [#allocation6], 4294967040  ;;  %v250_v0 = vmov 0.0|0.0   ;;  %vm251_vm0 = vmmov 0   ;;  %v252_v1 = vmov 0.0   ;;  %vm55_vm1 = vcmask 1041408  }
  0x27   :  { %161 = vmatprep.subr.bf16.mxu0 %v250_v0  ;;  %158 = vmatprep.mubr.msk.f32.mxu0 %vm251_vm0, %v252_v1  ;;  %v42_v2 = vld [vmem:[#allocation5] sm:$0xff]  ;;  %v43_v3 = vld [vmem:[#allocation5 + $0x8] sm:$0x3]  ;;  %vm253_vm2 = vmmov 1   ;;  %v41_v5 = vld [vmem:[#allocation2] sm:$0xff]  ;;  %vm51_vm4 = vcmask 80896  }
  0x28   :  { %vm163_vm3 = vmpackc.low %vm55_vm1, %vm253_vm2  ;;  %v162_v4 = vpack.c.bf16 %v43_v3, %v42_v2  ;;  %v148_v6 = vld [vmem:[%s323_s2] ss:$0 sm:$0xff]  ;;  %s254_s11 = smov [#allocation7]  }
  0x29   :  { %s138_s12 = sshll.u32 %s254_s11, 4  ;;  %s139_s12 = int_to_ptr.vmem [resolvable:$true] %s138_s12 }
  0x2a   :  { %164 = vmatpush3.bf16.msk.msra.mxu0 %vm163_vm3, %v162_v4  ;;  %s218_s13 = scalar_lea.vmem %s139_s12, 128  ;;  %p223_p3 = scmp.lt.s32.totalorder %s139_s12, %s139_s12 }
  0x2b   :  { %p219_p2 = scmp.ne.s32.totalorder %s139_s12, %s218_s13  ;;  %p224_p4 = scmp.lt.s32.totalorder %s218_s13, %s218_s13 }
  0x2d   :  { %159 = vmatmul.mubr.msk.f32.vlgmr.msra.gmra.mrb[0].mxu0 %vm51_vm4, %v41_v5  ;;  %p225_p5 = por %p224_p4, %p223_p3 }
  0x2f   :  { %p226_p6 = pnand %p225_p5, %p219_p2 }
 0x100   :  { %v125_v7 = vpop.f32.mrb[0].mxu0 }
 0x101   :  { %v126_v8 = vadd.f32 %v148_v6, %v125_v7  ;;  %v160_v9 = vpop.f32.mrb[1].mxu0 }
 0x103   :  { %v129_v10 = vmax.f32 %v126_v8, 0.0 }
 0x105   :  { %v130_v11 = vmin.f32 %v129_v10, 5.0 }
 0x107   :  { %131 = vst [vmem:[#allocation7] sm:$0xff] %v130_v11 }
 0x108   :  { %229 = shalt.err (!%p226_p6)
}
 0x109   :  { %s230_s2 = scalar_lea.hbm %s324_s3, 128 }
 0x10a   :  { %p231_p7 = scmp.ne.s32.totalorder %s324_s3, %s230_s2  ;;  %p234_p8 = scmp.lt.u32.totalorder %s230_s2, %s324_s3 }
 0x10c   :  { %p236_p9 = pnand %p234_p8, %p231_p7 }
 0x10e   :  { %239 = shalt.err (!%p236_p9)
}
 0x10f   :  { %141 = dma.vmem_to_hbm [thread:$0]  %s139_s12, 128, %s324_s3, [#allocation4]  }
 0x110   :  { %244 = dma.done.wait [#allocation4], 128  }
 0x111   :  { %245 = vsyncadd [#allocation4], 4294967168 }
 0x112   :  { %145 = vsyncpa [#allocation3], 1 }
 0x113   :  { %146 = vsyncpa [#allocation6], 1 }
 0x114   :  { %147 = vsyncpa [#allocation4], 1 }

</bundles_post_ra>
